<compile_context>
chip_gen: v7x
topology: tpu7x:2x2x1
jax: 0.10.0
libtpu: 0.0.40
codegen_flags: <defaults>
</compile_context>

<pallas_src>
import math
import functools

import jax
import jax.numpy as jnp
from jax import lax
from jax.experimental import pallas as pl
from jax.experimental.pallas import tpu as pltpu


def _round_up(x, m):
    return ((x + m - 1) // m) * m


def _arc_margin_kernel(has_tgt_ref, emb_ref, w_ref, lab_ref, out_ref, *,
                       cos_m, sin_m, th, mm, scale, easy_margin):
    i = pl.program_id(0)                      # batch-tile index
    j = pl.program_id(1)                      # class-tile index

    # cosine = emb_n @ w_n.T : contract the last dim of both operands (weight
    # stays in its native (tc, E) layout, no XLU transpose).  Operands arrive
    # pre-normalized in compute_dtype; accumulate in f32 on the MXU.
    cosine = lax.dot_general(
        emb_ref[...], w_ref[...],
        dimension_numbers=(((1,), (1,)), ((), ())),
        preferred_element_type=jnp.float32)                       # (tb, tc)

    tb, tc = out_ref.shape
    has_target = has_tgt_ref[i, j] != 0       # scalar read from SMEM table

    @pl.when(has_target)
    def _():
        # max(..., 0) guards the sqrt when bf16 rounding makes |cosine| > 1.
        sine = jnp.sqrt(jnp.maximum(1.0 - cosine * cosine + 1e-06, 0.0))
        phi = cosine * cos_m - sine * sin_m
        if easy_margin:
            phi = jnp.where(cosine > 0.0, phi, cosine)
        else:
            phi = jnp.where(cosine > th, phi, cosine - mm)
        class_ids = lax.broadcasted_iota(jnp.int32, (tb, tc), 1) + j * tc
        is_target = class_ids == lab_ref[...]                     # (tb,1) bcast
        out_ref[...] = jnp.where(is_target, phi, cosine) * scale

    @pl.when(jnp.logical_not(has_target))
    def _():
        # No target class falls in this tile: margin math is a no-op.
        out_ref[...] = cosine * scale


def arc_margin_product(embeddings, weight, labels, *,
                       scale=64.0, margin=0.5, easy_margin=False,
                       tb=256, tc=512, compute_dtype=jnp.bfloat16):
    """Pallas implementation of ArcMarginProduct.forward.

    embeddings: (B, E) float32
    weight:     (C, E) float32
    labels:     (B,)   int32
    returns:    (B, C) float32

    tb / tc are the batch / class tile sizes (8- / 128-aligned).  Operands are
    streamed in `compute_dtype` (bf16 by default on all generations — halves
    the dominant weight HBM stream; accumulation is always f32).  Pass
    compute_dtype=jnp.float32 for bit-tight agreement with an f32 reference.
    """
    B, E = embeddings.shape
    C, E2 = weight.shape
    assert E == E2

    # --- wrapper-side L2 normalization (matches F.normalize, eps=1e-12) ----
    emb32 = embeddings.astype(jnp.float32)
    w32 = weight.astype(jnp.float32)
    emb_n = emb32 / jnp.maximum(
        jnp.sqrt(jnp.sum(emb32 * emb32, axis=1, keepdims=True)), 1e-12)
    w_n = w32 / jnp.maximum(
        jnp.sqrt(jnp.sum(w32 * w32, axis=1, keepdims=True)), 1e-12)

    # --- tiling / padding ---------------------------------------------------
    tb = min(tb, _round_up(B, 8))
    tc = min(tc, _round_up(C, 128))
    B_pad = _round_up(B, tb)
    C_pad = _round_up(C, tc)
    E_pad = _round_up(E, 128)          # MXU contraction / lane dim alignment

    emb_n = jnp.pad(emb_n, ((0, B_pad - B), (0, E_pad - E))).astype(compute_dtype)
    w_n = jnp.pad(w_n, ((0, C_pad - C), (0, E_pad - E))).astype(compute_dtype)

    lab_pad = jnp.pad(labels.astype(jnp.int32), (0, B_pad - B),
                      constant_values=-1)          # never matches a class id
    labels2d = lab_pad.reshape(B_pad, 1)

    nb, nc = B_pad // tb, C_pad // tc
    # (nb, nc) table: 1 iff any label of batch tile i lands in class tile j.
    lab_tiles = lab_pad.reshape(nb, tb)
    tile_of_lab = jnp.where(lab_tiles >= 0, lab_tiles // tc, -1)
    has_target = (tile_of_lab[:, :, None] ==
                  jnp.arange(nc, dtype=jnp.int32)[None, None, :]
                  ).any(axis=1).astype(jnp.int32)

    kernel = functools.partial(
        _arc_margin_kernel,
        cos_m=math.cos(margin),
        sin_m=math.sin(margin),
        th=math.cos(math.pi - margin),
        mm=math.sin(math.pi - margin) * margin,
        scale=scale,
        easy_margin=easy_margin,
    )

    out = pl.pallas_call(
        kernel,
        out_shape=jax.ShapeDtypeStruct((B_pad, C_pad), jnp.float32),
        grid_spec=pltpu.PrefetchScalarGridSpec(
            num_scalar_prefetch=1,                 # has_target table -> SMEM
            grid=(nb, nc),
            in_specs=[
                # normalized embeddings: one batch tile, reused across class tiles
                pl.BlockSpec((tb, E_pad), lambda i, j, ht: (i, 0)),
                # normalized weight: one class tile per step (double-buffered DMA)
                pl.BlockSpec((tc, E_pad), lambda i, j, ht: (j, 0)),
                # labels: tiny per-batch-tile block
                pl.BlockSpec((tb, 1), lambda i, j, ht: (i, 0)),
            ],
            out_specs=pl.BlockSpec((tb, tc), lambda i, j, ht: (i, j)),
        ),
        compiler_params=pltpu.CompilerParams(
            # No cross-step state: both axes are independent and megacore-
            # shardable (important for single-batch-tile problems on v7x).
            dimension_semantics=("parallel", "parallel"),
            # Real footprint at default tiles is a few MiB; 32 MiB leaves
            # ample headroom on v7x's 64 MiB and never caps v5e/v6e.
            vmem_limit_bytes=32 * 1024 * 1024,
        ),
    )(has_target, emb_n, w_n, labels2d)

    return out[:B, :C]


def _reference(embeddings, weight, labels, *, scale=64.0, margin=0.5,
               easy_margin=False):
    emb_n = embeddings / jnp.maximum(
        jnp.linalg.norm(embeddings, axis=1, keepdims=True), 1e-12)
    w_n = weight / jnp.maximum(
        jnp.linalg.norm(weight, axis=1, keepdims=True), 1e-12)
    cosine = emb_n @ w_n.T
    sine = jnp.sqrt(1.0 - cosine ** 2 + 1e-06)
    phi = cosine * math.cos(margin) - sine * math.sin(margin)
    th = math.cos(math.pi - margin)
    mm = math.sin(math.pi - margin) * margin
    if easy_margin:
        phi = jnp.where(cosine > 0, phi, cosine)
    else:
        phi = jnp.where(cosine > th, phi, cosine - mm)
    one_hot = jax.nn.one_hot(labels, cosine.shape[1], dtype=cosine.dtype)
    return (one_hot * phi + (1.0 - one_hot) * cosine) * scale


if __name__ == "__main__":
    # Small shapes chosen so the kernel exercises a real 2x2 tile grid
    # (tb=8, tc=128), class-dim padding (200 -> 256) and E padding (64 -> 128).
    B, E, C = 16, 64, 200
    key = jax.random.PRNGKey(0)
    k_emb, k_w, k_lab = jax.random.split(key, 3)

    embeddings = jax.random.normal(k_emb, (B, E), dtype=jnp.float32)

    # Deterministic xavier_uniform_-style init for weight (C, E).
    bound = math.sqrt(6.0 / (E + C))
    weight = jax.random.uniform(k_w, (C, E), dtype=jnp.float32,
                                minval=-bound, maxval=bound)

    labels = jax.random.randint(k_lab, (B,), 0, C, dtype=jnp.int32)

    ref = _reference(embeddings, weight, labels,
                     scale=64.0, margin=0.5, easy_margin=False)

    # 1) f32 compute path: strict check against the f32 reference.
    logits_f32 = arc_margin_product(embeddings, weight, labels,
                                    scale=64.0, margin=0.5, easy_margin=False,
                                    tb=8, tc=128,
                                    compute_dtype=jnp.float32)
    logits_f32 = jax.block_until_ready(logits_f32)
    assert logits_f32.shape == (B, C)
    assert jnp.allclose(logits_f32, ref, atol=1e-3, rtol=1e-4), \
        "f32 kernel mismatch vs reference"

    # 2) Default bf16 streaming path (production config): loose check.
    logits_bf16 = arc_margin_product(embeddings, weight, labels,
                                     scale=64.0, margin=0.5, easy_margin=False)
    logits_bf16 = jax.block_until_ready(logits_bf16)
    assert logits_bf16.shape == (B, C)
    assert bool(jnp.all(jnp.isfinite(logits_bf16))), "bf16 kernel produced NaN/Inf"
    assert float(jnp.max(jnp.abs(logits_bf16 - ref))) < 1.5, \
        "bf16 kernel deviates too far from reference"

    print("KERNEL_OK")
</pallas_src>

<mosaic_0001>
module attributes {stable_mosaic.version = 11 : i64} {
  func.func @_arc_margin_kernel(%arg0: i32, %arg1: i32, %arg2: memref<2x2xi32, #tpu.memory_space<smem>>, %arg3: memref<8x128xf32, #tpu.memory_space<vmem>>, %arg4: memref<128x128xf32, #tpu.memory_space<vmem>>, %arg5: memref<8x1xi32, #tpu.memory_space<vmem>>, %arg6: memref<8x128xf32, #tpu.memory_space<vmem>>) attributes {dimension_semantics = [#tpu.dimension_semantics<parallel>, #tpu.dimension_semantics<parallel>], iteration_bounds = array<i64: 2, 2>, scalar_prefetch = 1 : i64, scratch_operands = 0 : i64, tpu.core_type = #tpu.core_type<tc>, window_params = [{transform_indices = @transform_0, window_bounds = array<i64: 8, 128>}, {transform_indices = @transform_1, window_bounds = array<i64: 128, 128>}, {transform_indices = @transform_2, window_bounds = array<i64: 8, 1>}, {transform_indices = @transform_3, window_bounds = array<i64: 8, 128>}]} {
    %c0 = arith.constant 0 : index
    %c0_0 = arith.constant 0 : index
    %0 = vector.load %arg3[%c0, %c0_0] : memref<8x128xf32, #tpu.memory_space<vmem>>, vector<8x128xf32>
    %c0_1 = arith.constant 0 : index
    %c0_2 = arith.constant 0 : index
    %1 = vector.load %arg4[%c0_1, %c0_2] : memref<128x128xf32, #tpu.memory_space<vmem>>, vector<128x128xf32>
    %cst = arith.constant dense<0.000000e+00> : vector<8x128xf32>
    %2 = tpu.matmul %0, %1, %cst {dimension_numbers = #tpu.dot_dimension_numbers<[1], [1], [0], [0], [0, 0, 1, 0], [], []>} : vector<8x128xf32>, vector<128x128xf32>, vector<8x128xf32> -> vector<8x128xf32>
    %3 = arith.index_cast %arg0 : i32 to index
    %4 = arith.index_cast %arg1 : i32 to index
    %5 = memref.load %arg2[%3, %4] : memref<2x2xi32, #tpu.memory_space<smem>>
    %c0_i32 = arith.constant 0 : i32
    %6 = arith.cmpi ne, %5, %c0_i32 : i32
    %7 = arith.extui %6 : i1 to i32
    %c0_i32_3 = arith.constant 0 : i32
    %8 = arith.cmpi ne, %7, %c0_i32_3 : i32
    scf.if %8 {
      %12 = arith.mulf %2, %2 : vector<8x128xf32>
      %cst_5 = arith.constant 1.000000e+00 : f32
      %13 = vector.broadcast %cst_5 : f32 to vector<8x128xf32>
      %14 = arith.subf %13, %12 : vector<8x128xf32>
      %cst_6 = arith.constant 9.99999997E-7 : f32
      %15 = vector.broadcast %cst_6 : f32 to vector<8x128xf32>
      %16 = arith.addf %14, %15 : vector<8x128xf32>
      %cst_7 = arith.constant 0.000000e+00 : f32
      %17 = vector.broadcast %cst_7 : f32 to vector<8x128xf32>
      %18 = arith.maximumf %16, %17 : vector<8x128xf32>
      %19 = math.sqrt %18 : vector<8x128xf32>
      %cst_8 = arith.constant 0.87758255 : f32
      %20 = vector.broadcast %cst_8 : f32 to vector<8x128xf32>
      %21 = arith.mulf %2, %20 : vector<8x128xf32>
      %cst_9 = arith.constant 0.47942555 : f32
      %22 = vector.broadcast %cst_9 : f32 to vector<8x128xf32>
      %23 = arith.mulf %19, %22 : vector<8x128xf32>
      %24 = arith.subf %21, %23 : vector<8x128xf32>
      %cst_10 = arith.constant -0.87758255 : f32
      %25 = vector.broadcast %cst_10 : f32 to vector<8x128xf32>
      %26 = arith.cmpf ogt, %2, %25 : vector<8x128xf32>
      %cst_11 = arith.constant 0.239712775 : f32
      %27 = vector.broadcast %cst_11 : f32 to vector<8x128xf32>
      %28 = arith.subf %2, %27 : vector<8x128xf32>
      %29 = arith.select %26, %24, %28 : vector<8x128xi1>, vector<8x128xf32>
      %30 = tpu.iota {dimensions = array<i32: 1>} : vector<8x128xi32>
      %c128_i32 = arith.constant 128 : i32
      %31 = arith.muli %arg1, %c128_i32 : i32
      %32 = vector.broadcast %31 : i32 to vector<8x128xi32>
      %33 = arith.addi %30, %32 : vector<8x128xi32>
      %c0_12 = arith.constant 0 : index
      %c0_13 = arith.constant 0 : index
      %34 = vector.load %arg5[%c0_12, %c0_13] : memref<8x1xi32, #tpu.memory_space<vmem>>, vector<8x1xi32>
      %35 = vector.broadcast %34 : vector<8x1xi32> to vector<8x128xi32>
      %36 = arith.cmpi eq, %33, %35 : vector<8x128xi32>
      %37 = arith.select %36, %29, %2 : vector<8x128xi1>, vector<8x128xf32>
      %cst_14 = arith.constant 6.400000e+01 : f32
      %38 = vector.broadcast %cst_14 : f32 to vector<8x128xf32>
      %39 = arith.mulf %37, %38 : vector<8x128xf32>
      %c0_15 = arith.constant 0 : index
      %c0_16 = arith.constant 0 : index
      %40 = vector.load %arg6[%c0_15, %c0_16] : memref<8x128xf32, #tpu.memory_space<vmem>>, vector<8x128xf32>
      tpu.vector_store %arg6[%c0_15, %c0_16], %39 {strides = array<i32>} : memref<8x128xf32, #tpu.memory_space<vmem>>, vector<8x128xf32>,
    } else {
    }
    %true = arith.constant true
    %9 = arith.xori %6, %true : i1
    %10 = arith.extui %9 : i1 to i32
    %c0_i32_4 = arith.constant 0 : i32
    %11 = arith.cmpi ne, %10, %c0_i32_4 : i32
    scf.if %11 {
      %cst_5 = arith.constant 6.400000e+01 : f32
      %12 = vector.broadcast %cst_5 : f32 to vector<8x128xf32>
      %13 = arith.mulf %2, %12 : vector<8x128xf32>
      %c0_6 = arith.constant 0 : index
      %c0_7 = arith.constant 0 : index
      %14 = vector.load %arg6[%c0_6, %c0_7] : memref<8x128xf32, #tpu.memory_space<vmem>>, vector<8x128xf32>
      tpu.vector_store %arg6[%c0_6, %c0_7], %13 {strides = array<i32>} : memref<8x128xf32, #tpu.memory_space<vmem>>, vector<8x128xf32>,
    } else {
    }
    return
  }
  func.func @transform_0(%arg0: i32, %arg1: i32, %arg2: memref<2x2xi32, #tpu.memory_space<smem>>) -> (i32, i32) {
    %c0_i32 = arith.constant 0 : i32
    %c0_i32_0 = arith.constant 0 : i32
    return %arg0, %c0_i32 : i32, i32
  }
  func.func @transform_1(%arg0: i32, %arg1: i32, %arg2: memref<2x2xi32, #tpu.memory_space<smem>>) -> (i32, i32) {
    %c0_i32 = arith.constant 0 : i32
    %c0_i32_0 = arith.constant 0 : i32
    return %arg1, %c0_i32 : i32, i32
  }
  func.func @transform_2(%arg0: i32, %arg1: i32, %arg2: memref<2x2xi32, #tpu.memory_space<smem>>) -> (i32, i32) {
    %c0_i32 = arith.constant 0 : i32
    %c0_i32_0 = arith.constant 0 : i32
    return %arg0, %c0_i32 : i32, i32
  }
  func.func @transform_3(%arg0: i32, %arg1: i32, %arg2: memref<2x2xi32, #tpu.memory_space<smem>>) -> (i32, i32) {
    %c0_i32 = arith.constant 0 : i32
    return %arg0, %arg1 : i32, i32
  }
}

</mosaic_0001>

<bundles_post_ra>
// kernel: tpu_custom_call.1
= control target key start
LH: loop header
LB: loop body
LE: loop exit
PB: predicated region body
PF: predicated region fallthrough
CT: control target
= control target key end

     0   :  { %s1187_s0 = inlined_call_operand.vmem [shape: s32[2,2], index: 0, kind: input, shape index: {}]   ;;  %s1188_s1 = inlined_call_operand.vmem [shape: f32[16,128], index: 1, kind: input, shape index: {}]   ;;  %s1189_s2 = inlined_call_operand.hbm [shape: f32[256,128], index: 2, kind: input, shape index: {}]   ;;  %s1190_s3 = inlined_call_operand.vmem [shape: s32[16,1], index: 3, kind: input, shape index: {}]   ;;  %s1191_s4 = inlined_call_operand.hbm [shape: f32[16,256], index: 4, kind: output, shape index: {}]  }
   0x1   :  { %s9_s17 = sshll.u32 %s1187_s0, 4  ;;  %s10_s17 = int_to_ptr.vmem [resolvable:$true] %s9_s17 }
   0x2   :  { %s714_s18 = scalar_lea.vmem %s10_s17, 32  ;;  %p719_p1 = scmp.lt.s32.totalorder %s10_s17, %s10_s17 }
   0x3   :  { %p715_p0 = scmp.ne.s32.totalorder %s10_s17, %s714_s18  ;;  %p720_p2 = scmp.lt.s32.totalorder %s714_s18, %s714_s18 }
   0x5   :  { %p721_p3 = por %p720_p2, %p719_p1 }
   0x7   :  { %p722_p4 = pnand %p721_p3, %p715_p0 }
   0x9   :  { %725 = shalt.err (!%p722_p4)  }
   0xa   :  { %s882_s19 = smov [#allocation3]  }
   0xb   :  { %12 = dma.vmem_to_smem %s10_s17, 32, %s882_s19, [#allocation2] }
   0xc   :  { %828 = dma.done.wait [#allocation2], 32 }
   0xd   :  { %829 = vsyncadd [#allocation2], 4294967264 }
   0xe   :  { %14 = sfence }
   0xf   :  { %15 = vsyncpa [#allocation5], 0 }
  0x10   :  { %17 = vsyncpa [#allocation5 + $0x1], 0 }
  0x11   :  { %18 = vsyncpa [#allocation6], 0 }
  0x12   :  { %20 = vsyncpa [#allocation6 + $0x1], 0  ;;  %s919_s20 = smov 0   ;;  %s921_s0 = smov 0  }
  0x13   :  { %s923_s21 = smov 0   ;;  %s925_s22 = smov 0  }
  0x14   :  { %s927_s23 = smov 0   ;;  %s929_s24 = smov 0  }
  0x15   :  { %s931_s25 = smov 0   ;;  %s933_s26 = smov 0  }
  0x16   :  { %s935_s27 = smov 0   ;;  %s937_s28 = smov 0  }
  0x17   :  { %s939_s29 = smov 0  }
  0x18 LB: > { %s503_s30 = sadd.s32 4294967295, %s880_s29   ;;  %s504_s5 = sadd.s32 4294967294, %s880_s29   ;;  %s880_s29 = sphi %s939_s29, %s26_s29   ;;  %s876_s28 = sphi %s937_s28, %s1213_s28   ;;  %s872_s27 = sphi %s935_s27, %s1212_s27   ;;  %s868_s26 = sphi %s933_s26, %s1211_s26   ;;  %s864_s25 = sphi %s931_s25, %s1210_s25   ;;  %s860_s24 = sphi %s929_s24, %s1209_s24   ;;  %s856_s23 = sphi %s927_s23, %s1208_s23   ;;  %s852_s22 = sphi %s925_s22, %s1207_s22   ;;  %s848_s21 = sphi %s923_s21, %s1206_s21   ;;  %s844_s0 = sphi %s921_s0, %s1205_s0   ;;  %s840_s20 = sphi %s919_s20, %s1204_s20  }
  0x19   : > { %s35_s6 = sadd.s32 1, %s872_s27  ;;  %s38_s7 = sadd.s32 1, %s876_s28 }
  0x1a   : > { %p36_p5 = scmp.ge.s32.totalorder %s35_s6, 2  ;;  %s71_s8 = sadd.s32 1, %s860_s24 }
  0x1b   : > { %p78_p6 = scmp.ne.s32.totalorder %s860_s24, %s856_s23  ;;  %p79_p7 = scmp.eq.s32.totalorder %s880_s29, 0 }
  0x1c   : > { %s1215_s6 = smov (%p36_p5, %s35_s6), 0  ;;  %s1217_s7 = smov (!%p36_p5, %s38_s7), %s876_s28 }
  0x1d   : > { %s68_s9 = ssub.s32 %s872_s27, %s1215_s6  ;;  %p985_p8 = por %p79_p7, %p78_p6 }
  0x1e   : > { %p40_p9 = scmp.ge.s32.totalorder %s1217_s7, 2  ;;  %p69_p10 = scmp.eq.s32.totalorder %s68_s9, 0 }
  0x1f   : > { %p84_p11 = scmp.ne.s32.totalorder %s856_s23, %s852_s22  ;;  %p85_p12 = scmp.eq.s32.totalorder %s503_s30, 0 }
  0x20   : > { %s1219_s7 = smov (%p40_p9, %s1217_s7), 0  ;;  %s125_s15 = sadd.s32 1, %s848_s21 }
  0x21   : > { %1195 = sst [smem:[#allocation11_spill]] %s1219_s7  ;;  %p995_p13 = por %p85_p12, %p84_p11 }
  0x22   : > { %s993_s11 = scalar_select %p69_p10, %s860_s24, %s71_s8  }
  0x23   : > { %s120_s13 = ssub.s32 %s876_s28, %s1219_s7  ;;  %p135_p1 = scmp.ne.s32.totalorder %s848_s21, %s844_s0 }
  0x24   : > { %s122_s14 = sor.u32 %s120_s13, %s68_s9  ;;  %p136_p2 = scmp.eq.s32.totalorder %s503_s30, 3 }
  0x25   : > { %p123_p0 = scmp.eq.s32.totalorder %s122_s14, 0  ;;  %p141_p3 = scmp.ne.s32.totalorder %s844_s0, %s840_s20 }
  0x26   : > { %p1009_p4 = por %p136_p2, %p135_p1  ;;  %p142_p5 = scmp.eq.s32.totalorder %s504_s5, 3 }
  0x27   : > { %s1007_s16 = scalar_select %p123_p0, %s848_s21, %s125_s15  }
  0x28   : > { %s1197_s17 = scalar_select %p1009_p4, 1, 0 }
  0x29   : > { %p614_p6 = scmp.lt.s32.totalorder %s880_s29, 4  ;;  %p1014_p7 = por %p142_p5, %p141_p3 }
  0x2a   : > { %s169_s19 = sand.u32 1, %s860_s24   ;;  %s525_s8 = sshll.u32 %s872_s27, 11 }
  0x2b   : > { %s1198_s18 = scalar_select %p1014_p7, 1, 0 }
  0x2c   : > { %s507_s22 = sshll.u32 %s169_s19, 7  ;;  %s1023_s30 = scalar_lea.hbm %s1189_s2, %s525_s8 }
  0x2d   : > { %s173_s14 = scalar_lea.vmem [#allocation4], %s507_s22  ;;  %p1029_p9 = pnand %p614_p6, %p985_p8 }
  0x2e   : > { %s180_s15 = sshll.u32 %s173_s14, 4  ;;  %s1034_s7 = scalar_lea.sflag [#allocation5], %s169_s19  ;;  %s1025_s15 = int_to_ptr.vmem [resolvable:$true] %s180_s15 }
  0x2f   : > { %s726_s8 = scalar_lea.hbm %s1023_s30, 2048  ;;  %p728_p12 = pneg %p1029_p9 }
  0x30   : > { %p727_p11 = scmp.ne.s32.totalorder %s1023_s30, %s726_s8  ;;  %s731_s10 = scalar_lea.hbm %s1189_s2, 4096 }
  0x31   : > { %p732_p8 = scmp.lt.u32.totalorder %s1023_s30, %s1189_s2  ;;  %p733_p2 = scmp.lt.u32.totalorder %s731_s10, %s726_s8 }
  0x32   : > { %p729_p0 = pnand %p728_p12, %p727_p11  ;;  %p735_p5 = scmp.lt.u32.totalorder %s726_s8, %s1023_s30 }
  0x33   : > { %p734_p3 = por %p733_p2, %p732_p8 }
  0x34   : > { %p730_p1 = pneg %p729_p0 }
  0x35   : > { %p736_p6 = por %p735_p5, %p734_p3 }
  0x37   : > { %p737_p10 = pnand %p736_p6, %p730_p1 }
  0x39   : > { %740 = shalt.err (!%p737_p10)
}
  0x3a   : > { %s741_s19 = scalar_lea.vmem %s1025_s15, 2048  ;;  %s883_s22 = smov [#allocation4]  }
  0x3b   : > { %p742_p11 = scmp.ne.s32.totalorder %s1025_s15, %s741_s19  ;;  %s746_s9 = sshll.u32 %s883_s22, 4  ;;  %s747_s9 = int_to_ptr.vmem [resolvable:$false] %s746_s9 }
  0x3c   : > { %s748_s13 = scalar_lea.vmem %s747_s9, 4096  ;;  %p749_p4 = scmp.lt.s32.totalorder %s1025_s15, %s747_s9 }
  0x3d   : > { %p744_p0 = pnand %p742_p11, %p728_p12  ;;  %p750_p8 = scmp.lt.s32.totalorder %s748_s13, %s741_s19 }
  0x3f   : > { %p745_p7 = pneg %p744_p0  ;;  %p751_p2 = por %p750_p8, %p749_p4 }
  0x41   : > { %p752_p3 = pnand %p751_p2, %p745_p7 }
  0x43   : > { %755 = shalt.err (!%p752_p3)
}
  0x44   : > { %s884_s8 = smov 128   ;;  %s885_s10 = smov 8  }
  0x45   : > { %609 = dma.hbm_to_vmem [thread:$0]  (!%p1029_p9), %s1023_s30, 2048, %s1025_s15, %s1034_s7, %s884_s8, %s884_s8, %s885_s10  }
  0x46   : > { %p195_p10 = scmp.lt.s32.totalorder %s880_s29, 5  ;;  %p1200_p12 = scmp.ge.s32.totalorder %s880_s29, 1 }
  0x48   : > { %p196_p1 = pnand %p1200_p12, %p195_p10 }
  0x49   : > { %s201_s14 = sand.u32 (!%p196_p1), 1, %s856_s23  }
  0x4a   : > { %199 = sbr.rel (%p196_p1) target bundleno = 428 (0x1ac), region = 32  ;;  %s511_s19 = sshll.u32 (!%p196_p1), %s201_s14, 7 }
  0x4b   : > { %s202_s22 = scalar_lea.sflag (!%p196_p1), [#allocation5], %s201_s14  ;;  %s1066_s9 = scalar_lea.vmem (!%p196_p1), [#allocation4], %s511_s19 }
  0x51   : > { %831 = dma.done.wait (%p995_p13), %s202_s22, 2048  }
  0x52   : > { %833 = vsyncadd (%p995_p13), %s202_s22, 4294965248  ;;  %s332_s7 = sshra.s32 %s864_s25, 7  ;;  %s337_s30 = sand.u32 127, %s864_s25  ;;  %v886_v0 = vmov 0.0|0.0   ;;  %vm887_vm0 = vmmov 0   ;;  %v888_v1 = vmov 0.0  }
  0x53   : > { %s334_s15 = sadd.s32 %s868_s26, %s332_s7  ;;  %s233_s5 = sand.u32 1, %s844_s0   ;;  %578 = vmatprep.subr.bf16.mxu0 %v886_v0  ;;  %575 = vmatprep.mubr.msk.f32.mxu0 %vm887_vm0, %v888_v1  ;;  %v246_v2 = vld [vmem:[%s1066_s9] sm:$0xff]  ;;  %v247_v3 = vld [vmem:[%s1066_s9 + $0x8] sm:$0xff]  ;;  %v248_v5 = vld [vmem:[%s1066_s9 + $0x10] sm:$0xff] }
  0x54   : > { %s515_s12 = sshll.u32 %s334_s15, 7  ;;  %s1078_s13 = sshll.u32 %s233_s5, 3  ;;  %v579_v4 = vpack.c.bf16 %v247_v3, %v246_v2  ;;  %v249_v6 = vld [vmem:[%s1066_s9 + $0x18] sm:$0xff]  ;;  %v250_v8 = vld [vmem:[%s1066_s9 + $0x20] sm:$0xff]  ;;  %v251_v9 = vld [vmem:[%s1066_s9 + $0x28] sm:$0xff] }
  0x55   : > { %s338_s8 = sadd.s32 %s515_s12, %s337_s30  ;;  %p236_p13 = scmp.lt.s32.totalorder %s868_s26, 1  ;;  %v582_v7 = vpack.c.bf16 %v249_v6, %v248_v5  ;;  %v585_v10 = vpack.c.bf16 %v251_v9, %v250_v8  ;;  %v252_v11 = vld [vmem:[%s1066_s9 + $0x30] sm:$0xff]  ;;  %v253_v12 = vld [vmem:[%s1066_s9 + $0x38] sm:$0xff]  ;;  %v254_v14 = vld [vmem:[%s1066_s9 + $0x40] sm:$0xff] }
  0x56   : > { %s1080_s10 = sld [smem:[#allocation3 + %s338_s8]]  ;;  %580 = vmatpush3.bf16.xpose.msra.mxu0 %v579_v4  ;;  %v588_v13 = vpack.c.bf16 %v253_v12, %v252_v11  ;;  %v255_v15 = vld [vmem:[%s1066_s9 + $0x48] sm:$0xff]  ;;  %v256_v17 = vld [vmem:[%s1066_s9 + $0x50] sm:$0xff]  ;;  %v257_v18 = vld [vmem:[%s1066_s9 + $0x58] sm:$0xff]  ;;  %s1116_s22 = scalar_lea.vmem [#allocation7], %s1078_s13 }
  0x57   : > { %s1084_s14 = scalar_select %p236_p13, %s868_s26, 1  ;;  %581 = vmatprep.subr.bf16.mxu0 %v886_v0  ;;  %v591_v16 = vpack.c.bf16 %v255_v15, %v254_v14  ;;  %v594_v19 = vpack.c.bf16 %v257_v18, %v256_v17  ;;  %v258_v20 = vld [vmem:[%s1066_s9 + $0x60] sm:$0xff]  ;;  %v259_v21 = vld [vmem:[%s1066_s9 + $0x68] sm:$0xff]  ;;  %v260_v23 = vld [vmem:[%s1066_s9 + $0x70] sm:$0xff] }
  0x58   : > { %v597_v22 = vpack.c.bf16 %v259_v21, %v258_v20  ;;  %v261_v24 = vld [vmem:[%s1066_s9 + $0x78] sm:$0xff] }
  0x59   : > { %s513_s19 = sshll.u32 %s1084_s14, 3  ;;  %v600_v25 = vpack.c.bf16 %v261_v24, %v260_v23 }
  0x5a   : > { %s1094_s30 = scalar_lea.vmem %s1190_s3, %s513_s19  ;;  %s239_s8 = scalar_lea.vmem %s1188_s1, %s513_s19 }
  0x5b   : > { %v245_v26 = vld [vmem:[%s239_s8] sm:$0xff] }
  0x5c   : > { %p516_p4 = scmp.eq.s32.totalorder %s1080_s10, 0 }
  0x5d   : > { %v366_v29 = vld [vmem:[%s1094_s30] sm:$0xff] (!%p516_p4)  ;;  %v889_v30 = vmov (!%p516_p4), 0   ;;  %v361_v40 = vlaneseq (!%p516_p4)  ;;  %s518_s9 = sshll.u32 (!%p516_p4), %s864_s25, 7 }
  0x5e   : > { %583 = vmatpush3.bf16.xpose.msra.mxu0 %v582_v7  ;;  %711 = vset.pattern.permute.xlu0 (!%p516_p4), %v889_v30  ;;  %v364_v44 = vstv (!%p516_p4), %s518_s9 }
  0x5f   : > { %584 = vmatprep.subr.bf16.mxu0 %v886_v0  ;;  %368 = vperm.xlu0 (!%p516_p4), %711, %v366_v29   ;;  %v362_v43 = vand.u32 (!%p516_p4), 127, %v361_v40 }
  0x61   : > { %v365_v47 = vadd.s32 (!%p516_p4), %v364_v44, %v362_v43 }
  0x66   : > { %586 = vmatpush3.bf16.xpose.msra.mxu0 %v585_v10 }
  0x67   : > { %587 = vmatprep.subr.bf16.mxu0 %v886_v0 }
  0x6e   : > { %589 = vmatpush3.bf16.xpose.msra.mxu0 %v588_v13 }
  0x6f   : > { %590 = vmatprep.subr.bf16.mxu0 %v886_v0 }
  0x76   : > { %592 = vmatpush3.bf16.xpose.msra.mxu0 %v591_v16 }
  0x77   : > { %593 = vmatprep.subr.bf16.mxu0 %v886_v0 }
  0x7e   : > { %595 = vmatpush3.bf16.xpose.msra.mxu0 %v594_v19 }
  0x7f   : > { %596 = vmatprep.subr.bf16.mxu0 %v886_v0 }
  0x86   : > { %598 = vmatpush3.bf16.xpose.msra.mxu0 %v597_v22 }
  0x87   : > { %599 = vmatprep.subr.bf16.mxu0 %v886_v0 }
  0x8e   : > { %601 = vmatpush3.bf16.xpose.msra.mxu0 %v600_v25 }
  0x95   : > { %576 = vmatmul.mubr.f32.vlgmr.msra.gmra.mrb[0].mxu0 %v245_v26 }
  0xde   : > { %v369_v49 = vpop.permute.xlu0 (!%p516_p4), %368 }
  0xdf   : > { %vm370_vm4 = vcmp.eq.s32.totalorder (!%p516_p4), %v365_v47, %v369_v49 }
 0x163   : > { %343 = sbr.rel (%p516_p4) target bundleno = 393 (0x189), region = 40 }
 0x168   : > { %v328_v27 = vpop.f32.mrb[0].mxu0 }
 0x169   : > { %v577_v28 = vpop.f32.mrb[1].mxu0  ;;  %v344_v31 = vmul.f32 (!%p516_p4), %v328_v27, %v328_v27  ;;  %v355_v41 = vmul.f32 (!%p516_p4), 0.87758255, %v328_v27  ;;  %v517_v46 = vadd.f32 (!%p516_p4), -0.23971277, %v328_v27 }
 0x16a   : > { %vm358_vm3 = vcmp.gt.f32.partialorder %v328_v27, -0.87758255 }
 0x16b   : > { %v345_v32 = vsub.f32 1.0, %v344_v31 }
 0x16d   : > { %v346_v33 = vadd.f32 1e-06, %v345_v32 }
 0x16f   : > { %v347_v34 = vmax.f32 %v346_v33, 0.0 }
 0x171   : > { %712 = vrsqrt.f32 %v347_v34  ;;  %vm350_vm1 = vcmp.eq.f32.partialorder %v347_v34, inf  ;;  %v353_v37 = vand.u32 2147483648, %v347_v34  ;;  %vm352_vm2 = vcmp.eq.f32.partialorder %v347_v34, 0.0 }
 0x17b   : > { %v713_v35 = vpop.eup %712 }
 0x17c   : > { %v349_v36 = vmul.f32 %v713_v35, %v347_v34 }
 0x17e   : > { %v351_v38 = vsel %vm350_vm1, %v347_v34, %v349_v36 }
 0x17f   : > { %v354_v39 = vsel %vm352_vm2, %v353_v37, %v351_v38 }
 0x180   : > { %v356_v42 = vmul.f32 0.47942555, %v354_v39 }
 0x182   : > { %v357_v45 = vsub.f32 %v355_v41, %v356_v42 }
 0x184   : > { %v360_v48 = vsel %vm358_vm3, %v357_v45, %v517_v46 }
 0x185   : > { %v371_v50 = vsel %vm370_vm4, %v360_v48, %v328_v27 }
 0x186   : > { %v372_v51 = vmul.f32 64.0, %v371_v50 }
 0x188   : > { %373 = vst [vmem:[%s1116_s22] sm:$0xff] %v372_v51 }
 0x189 PF: > { %p519_p7 = scmp.ne.s32.totalorder %s1080_s10, 0 }
 0x18a   : > { %v378_v52 = vmul.f32 (!%p519_p7), 64.0, %v328_v27 }
 0x18b   : > { %377 = sbr.rel (%p519_p7) target bundleno = 402 (0x192), region = 44 }
 0x18c   : > { %379 = vst [vmem:[%s1116_s22] sm:$0xff] (!%p519_p7), %v378_v52 }
 0x192 PF: > { %s521_s13 = sshll.u32 %s868_s26, 1  ;;  %s396_s19 = sshll.u32 %s1116_s22, 4  ;;  %s1127_s19 = int_to_ptr.vmem [resolvable:$true] %s396_s19 }
 0x193   : > { %s392_s14 = sadd.s32 %s864_s25, %s521_s13  ;;  %s381_s12 = scalar_lea.sflag [#allocation6], %s233_s5 }
 0x194   : > { %s522_s7 = sshll.u32 %s392_s14, 7  ;;  %s756_s8 = scalar_lea.vmem %s1127_s19, 128 }
 0x195   : > { %s394_s10 = scalar_lea.hbm %s1191_s4, %s522_s7  ;;  %p757_p9 = scmp.ne.s32.totalorder %s1127_s19, %s756_s8 }
 0x196   : > { %p1201_p5 = scmp.ne.s32.totalorder %s1197_s17, 0  ;;  %s890_s26 = smov [#allocation7]  }
 0x197   : > { %s760_s25 = sshll.u32 %s890_s26, 4  ;;  %s761_s25 = int_to_ptr.vmem [resolvable:$false] %s760_s25 }
 0x198   : > { %p758_p6 = pnand %p757_p9, %p1201_p5  ;;  %s762_s22 = scalar_lea.vmem %s761_s25, 256 }
 0x199   : > { %p763_p0 = scmp.lt.s32.totalorder %s1127_s19, %s761_s25  ;;  %p764_p8 = scmp.lt.s32.totalorder %s762_s22, %s756_s8 }
 0x19a   : > { %p759_p11 = pneg %p758_p6 }
 0x19b   : > { %p765_p2 = por %p764_p8, %p763_p0 }
 0x19d   : > { %p766_p3 = pnand %p765_p2, %p759_p11 }
 0x19f   : > { %769 = shalt.err (!%p766_p3)
}
 0x1a0   : > { %s770_s9 = scalar_lea.hbm %s394_s10, 128  ;;  %s774_s14 = scalar_lea.hbm %s1191_s4, 512 }
 0x1a1   : > { %p771_p10 = scmp.ne.s32.totalorder %s394_s10, %s770_s9  ;;  %p775_p13 = scmp.lt.u32.totalorder %s394_s10, %s1191_s4 }
 0x1a2   : > { %p776_p4 = scmp.lt.u32.totalorder %s774_s14, %s770_s9  ;;  %p778_p9 = scmp.lt.u32.totalorder %s770_s9, %s394_s10 }
 0x1a3   : > { %p772_p12 = pnand %p771_p10, %p1201_p5 }
 0x1a4   : > { %p777_p7 = por %p776_p4, %p775_p13 }
 0x1a5   : > { %p773_p1 = pneg %p772_p12 }
 0x1a6   : > { %p779_p6 = por %p778_p9, %p777_p7 }
 0x1a8   : > { %p780_p11 = pnand %p779_p6, %p773_p1 }
 0x1aa   : > { %783 = shalt.err (!%p780_p11)
}
 0x1ab   : > { %604 = dma.vmem_to_hbm [thread:$0]  (%p1201_p5), %s1127_s19, 128, %s394_s10, %s381_s12  }
 0x1ac PF: > { %p615_p0 = scmp.ge.s32.totalorder %s880_s29, 2  ;;  %s408_s15 = sand.u32 1, %s840_s20  }
 0x1ad   : > { %p1202_p8 = scmp.ne.s32.totalorder %s1198_s18, 0  ;;  %s409_s8 = scalar_lea.sflag [#allocation6], %s408_s15 }
 0x1af   : > { %p611_p2 = pnand %p615_p0, %p1202_p8 }
 0x1b1   : > { %835 = dma.done.wait (!%p611_p2), %s409_s8, 128  }
 0x1b2   : > { %837 = vsyncadd (!%p611_p2), %s409_s8, 4294967168  ;;  %s26_s29 = sadd.s32 1, %s880_s29   ;;  %s1203_s17 = sld [smem:[#allocation11_spill]] }
 0x1b3   : > { %p23_p3 = scmp.ge.s32.totalorder %s26_s29, 6   ;;  %s1204_s20 = smov %s844_s0 }
 0x1b4   : > { %s1205_s0 = smov %s848_s21  ;;  %s1206_s21 = smov %s1007_s16 }
 0x1b5   : > { %s1207_s22 = smov %s856_s23  ;;  %s1208_s23 = smov %s860_s24 }
 0x1b6   : > { %s1209_s24 = smov %s993_s11  ;;  %s1210_s25 = smov %s872_s27 }
 0x1b7   : > { %s1211_s26 = smov %s876_s28  ;;  %s1212_s27 = smov %s1215_s6 }
 0x1b8   : > { %s1213_s28 = smov %s1203_s17  ;;  %25 = sbr.rel (!%p23_p3) target bundleno = 24 (0x18), region = 91 }
 0x1bf   :  { %414 = vsyncpa [#allocation5], 1 }
 0x1c0   :  { %416 = vsyncpa [#allocation5 + $0x1], 1 }
 0x1c1   :  { %417 = vsyncpa [#allocation6], 1 }
 0x1c2   :  { %419 = vsyncpa [#allocation6 + $0x1], 1 }

</bundles_post_ra>
